<compile_context>
chip_gen: v5e
topology: v5e:2x2
jax: 0.10.0
libtpu: 0.0.40
codegen_flags: <defaults>
</compile_context>

<pallas_src>
import jax
import jax.numpy as jnp
import numpy as np
from jax.experimental import pallas as pl
from jax.experimental.pallas import tpu as pltpu

# ---- static config (mirrors args of rTEGNN.Model) ----
B = 2                # args.batch_size
N_E = 16             # args.n_e          (nodes)
WINDOW = 8           # args.window       (time steps)
CH = 4               # args.channel_size
K_SIZES = (2, 3, 4)  # args.k_size
HID1 = 32            # args.hid1
HID2 = 16            # args.hid2
HW = 3               # args.highway_window

WOUTS = tuple(WINDOW - k + 1 for k in K_SIZES)
D = sum(CH * w for w in WOUTS)      # 72 real conv features
DP = 128                            # lane-padded conv feature width
K_IN = 16                           # padded im2col K (8 time + 1 ones + 7 zero)
ONE_COL = WINDOW                    # x column that is constant 1.0 (bias lane)
BIAS_LANE = DP - 1                  # x_conv lane that is constant 1.0 (b1 fold)
N_ROWS = B * N_E                    # 32 stacked nodes

# slab row offsets (all multiples of 8 -> every in-kernel view is sublane aligned)
R_WCONV = 0
R_WHW = R_WCONV + K_IN              # 16
R_W1S = R_WHW + K_IN                # 32
R_A = R_W1S + 2 * DP                # 288
R_W2S = R_A + N_ROWS                # 320
R_B2 = R_W2S + 2 * HID1             # 384
R_W3S = R_B2 + 8                    # 392
R_TOTAL = R_W3S + 2 * HID2          # 424


def _rtegnn_kernel(xw_ref, slab_ref, out_ref):
    xw = xw_ref[...]                                     # (32, 16)

    wconv = slab_ref[R_WCONV:R_WCONV + K_IN, :]          # (16, 128)
    whw = slab_ref[R_WHW:R_WHW + K_IN, 0:1]              # (16, 1)
    w1s = slab_ref[R_W1S:R_W1S + 2 * DP, 0:HID1]         # (256, 32)
    A = slab_ref[R_A:R_A + N_ROWS, 0:N_ROWS]             # (32, 32) block-diag
    w2s = slab_ref[R_W2S:R_W2S + 2 * HID1, 0:HID2]       # (64, 16)
    b2 = slab_ref[R_B2:R_B2 + 1, 0:HID2]                 # (1, 16)
    w3s = slab_ref[R_W3S:R_W3S + 2 * HID2, 0:1]          # (32, 1)

    # im2col conv (all 3 branches, conv biases folded through the ones column)
    # in one MXU matmul; lanes 72..126 are zero pad, lane 127 is constant 1.0.
    full = jnp.dot(xw, wconv, preferred_element_type=jnp.float32)   # (32, 128)
    x_conv = jnp.maximum(full, 0.0)

    # highway head (+ highway bias + gnn3 bias), directly (32, 1) -> no slicing
    z = jnp.dot(xw, whw, preferred_element_type=jnp.float32)

    # DenseGraphConv (aggr='add'): lin_rel(A@x)+lin_root(x) == cat([A@x, x]) @ [Wrel; Wroot]
    def gconv(x, w):
        agg = jnp.dot(A, x, preferred_element_type=jnp.float32)
        cat = jnp.concatenate([agg, x], axis=1)
        return jnp.dot(cat, w, preferred_element_type=jnp.float32)

    x1 = jnp.maximum(gconv(x_conv, w1s), 0.0)            # (32, 32)  b1 folded via lane 127
    x2 = jnp.maximum(gconv(x1, w2s) + b2, 0.0)           # (32, 16)
    x3 = gconv(x2, w3s)                                   # (32, 1)   b3 folded into z

    out_ref[...] = x3 + z


def rtegnn_forward(x, slab):
    """x: (B, WINDOW, N_E) float32 -> (B, N_E) float32."""
    xw = jnp.transpose(x, (0, 2, 1)).astype(jnp.float32).reshape(N_ROWS, WINDOW)
    ones = jnp.ones((N_ROWS, 1), jnp.float32)
    pad = jnp.zeros((N_ROWS, K_IN - WINDOW - 1), jnp.float32)
    xw16 = jnp.concatenate([xw, ones, pad], axis=1)       # (32, 16)

    vmem = pl.BlockSpec(memory_space=pltpu.MemorySpace.VMEM)
    out = pl.pallas_call(
        _rtegnn_kernel,
        out_shape=jax.ShapeDtypeStruct((N_ROWS, 1), jnp.float32),
        in_specs=[vmem, vmem],
        out_specs=vmem,
    )(xw16, slab)
    return out.reshape(B, N_E)   # matches x3.squeeze() + z in PyTorch


def init_params(key):
    keys = jax.random.split(key, 20)

    def nrm(k, shape, scale=0.1):
        return (scale * jax.random.normal(k, shape)).astype(jnp.float32)

    # Adjacency A, built like __init__: threshold >0.05 -> 1, column-normalise.
    a_raw = jax.random.uniform(keys[0], (N_E, N_E), dtype=jnp.float32)
    a_raw = jnp.where(a_raw > 0.05, 1.0, a_raw)
    a_raw = a_raw / jnp.sum(a_raw, axis=0)
    A = jnp.tile(a_raw[None], (B, 1, 1))

    p = {'A': A}
    # Conv2d(1, CH, (1, k)) weights: (CH, k) + bias (CH,)
    p['w1'] = nrm(keys[1], (CH, K_SIZES[0]))
    p['b1'] = nrm(keys[2], (CH,))
    p['w2'] = nrm(keys[3], (CH, K_SIZES[1]))
    p['b2'] = nrm(keys[4], (CH,))
    p['w3'] = nrm(keys[5], (CH, K_SIZES[2]))
    p['b3'] = nrm(keys[6], (CH,))
    # highway Linear(HW, 1)
    p['whw'] = nrm(keys[7], (HW,))
    p['bhw'] = nrm(keys[8], (1,))
    # DenseGraphConv weights, stored pre-transposed so x @ W^T == x @ W_t
    p['wrel1_t'] = nrm(keys[9], (D, HID1))
    p['wroot1_t'] = nrm(keys[10], (D, HID1))
    p['brel1'] = nrm(keys[11], (1, HID1))
    p['wrel2_t'] = nrm(keys[12], (HID1, HID2))
    p['wroot2_t'] = nrm(keys[13], (HID1, HID2))
    p['brel2'] = nrm(keys[14], (1, HID2))
    p['wrel3_t'] = nrm(keys[15], (HID2, 1))
    p['wroot3_t'] = nrm(keys[16], (HID2, 1))
    p['brel3'] = nrm(keys[17], (1, 1))
    return p


def pack_params(p):
    """Host-side fusion of all module weights into ONE 128-lane f32 slab."""
    slab = np.zeros((R_TOTAL, DP), np.float32)

    # im2col conv weights: channel-major, time-minor per branch; branches k=2,3,4
    # (matches conv(c).permute(0,2,1,3).reshape + cat).  Bias lives in row ONE_COL.
    off = 0
    for w, b, k, wout in ((p['w1'], p['b1'], K_SIZES[0], WOUTS[0]),
                          (p['w2'], p['b2'], K_SIZES[1], WOUTS[1]),
                          (p['w3'], p['b3'], K_SIZES[2], WOUTS[2])):
        w = np.asarray(w)
        b = np.asarray(b)
        for c in range(CH):
            for t in range(wout):
                col = off + c * wout + t
                slab[R_WCONV + t:R_WCONV + t + k, col] = w[c]
                slab[R_WCONV + ONE_COL, col] = b[c]
        off += CH * wout
    # constant-1 lane of x_conv (used to fold gnn1 bias into w1s)
    slab[R_WCONV + ONE_COL, BIAS_LANE] = 1.0

    # highway column: taps on the last HW time steps; bias = highway bias + gnn3 bias
    slab[R_WHW + WINDOW - HW:R_WHW + WINDOW, 0] = np.asarray(p['whw'])
    slab[R_WHW + ONE_COL, 0] = (float(np.asarray(p['bhw'])[0]) +
                                float(np.asarray(p['brel3'])[0, 0]))

    # layer-1 stacked weights, 128-lane padded so cat([A@x, x]) is vreg-aligned
    slab[R_W1S:R_W1S + D, :HID1] = np.asarray(p['wrel1_t'])
    slab[R_W1S + DP:R_W1S + DP + D, :HID1] = np.asarray(p['wroot1_t'])
    slab[R_W1S + DP + BIAS_LANE, :HID1] = np.asarray(p['brel1'])[0]   # b1 fold

    # block-diagonal adjacency over the stacked batch (A is identical per batch)
    A_np = np.asarray(p['A'])
    for i in range(B):
        slab[R_A + i * N_E:R_A + (i + 1) * N_E, i * N_E:(i + 1) * N_E] = A_np[i]

    # layer-2 / layer-3 stacked weights + layer-2 bias
    slab[R_W2S:R_W2S + HID1, :HID2] = np.asarray(p['wrel2_t'])
    slab[R_W2S + HID1:R_W2S + 2 * HID1, :HID2] = np.asarray(p['wroot2_t'])
    slab[R_B2, :HID2] = np.asarray(p['brel2'])[0]
    slab[R_W3S:R_W3S + HID2, 0] = np.asarray(p['wrel3_t'])[:, 0]
    slab[R_W3S + HID2:R_W3S + 2 * HID2, 0] = np.asarray(p['wroot3_t'])[:, 0]

    return jnp.asarray(slab)


def reference_forward(x, p):
    """Plain-JAX re-implementation of the PyTorch forward (decoder='GNN')."""
    xw = jnp.transpose(x, (0, 2, 1))   # (B, N, T)
    cols = []
    for w, b, k, wout in ((p['w1'], p['b1'], K_SIZES[0], WOUTS[0]),
                          (p['w2'], p['b2'], K_SIZES[1], WOUTS[1]),
                          (p['w3'], p['b3'], K_SIZES[2], WOUTS[2])):
        for c in range(CH):
            acc = sum(xw[:, :, j:j + wout] * w[c, j] for j in range(k)) + b[c]
            cols.append(acc)   # (B, N, wout)
    x_conv = jax.nn.relu(jnp.concatenate(cols, axis=2))   # (B, N, D)

    def gconv(xx, wrel_t, wroot_t, bb):
        agg = jnp.einsum('bij,bjf->bif', p['A'], xx)
        return agg @ wrel_t + xx @ wroot_t + bb

    x1 = jax.nn.relu(gconv(x_conv, p['wrel1_t'], p['wroot1_t'], p['brel1']))
    x2 = jax.nn.relu(gconv(x1, p['wrel2_t'], p['wroot2_t'], p['brel2']))
    x3 = gconv(x2, p['wrel3_t'], p['wroot3_t'], p['brel3'])[..., 0]   # (B, N)
    z = jnp.einsum('bnt,t->bn', xw[:, :, WINDOW - HW:], p['whw']) + p['bhw'][0]
    return x3 + z


if __name__ == "__main__":
    key = jax.random.PRNGKey(0)
    kx, kparam = jax.random.split(key)
    x = jax.random.normal(kx, (B, WINDOW, N_E), dtype=jnp.float32)
    params = init_params(kparam)
    slab = pack_params(params)

    out = jax.jit(rtegnn_forward)(x, slab)
    out = jax.block_until_ready(out)

    ref = reference_forward(x, params)
    np.testing.assert_allclose(np.asarray(out), np.asarray(ref),
                               rtol=1e-3, atol=1e-3)
    print("KERNEL_OK")
</pallas_src>

<mosaic_0001>
module attributes {stable_mosaic.version = 11 : i64} {
  func.func @_rtegnn_kernel(%arg0: memref<32x16xf32, #tpu.memory_space<vmem>>, %arg1: memref<424x128xf32, #tpu.memory_space<vmem>>, %arg2: memref<32x1xf32, #tpu.memory_space<vmem>>) attributes {dimension_semantics = [], scalar_prefetch = 0 : i64, scratch_operands = 0 : i64, tpu.core_type = #tpu.core_type<tc>} {
    %c0 = arith.constant 0 : index
    %c0_0 = arith.constant 0 : index
    %0 = vector.load %arg0[%c0, %c0_0] : memref<32x16xf32, #tpu.memory_space<vmem>>, vector<32x16xf32>
    %c0_1 = arith.constant 0 : index
    %c0_2 = arith.constant 0 : index
    %1 = vector.load %arg1[%c0_1, %c0_2] : memref<424x128xf32, #tpu.memory_space<vmem>>, vector<16x128xf32>
    %c16 = arith.constant 16 : index
    %c0_3 = arith.constant 0 : index
    %2 = vector.load %arg1[%c16, %c0_3] : memref<424x128xf32, #tpu.memory_space<vmem>>, vector<16x1xf32>
    %c32 = arith.constant 32 : index
    %c0_4 = arith.constant 0 : index
    %3 = vector.load %arg1[%c32, %c0_4] : memref<424x128xf32, #tpu.memory_space<vmem>>, vector<256x32xf32>
    %c288 = arith.constant 288 : index
    %c0_5 = arith.constant 0 : index
    %4 = vector.load %arg1[%c288, %c0_5] : memref<424x128xf32, #tpu.memory_space<vmem>>, vector<32x32xf32>
    %c320 = arith.constant 320 : index
    %c0_6 = arith.constant 0 : index
    %5 = vector.load %arg1[%c320, %c0_6] : memref<424x128xf32, #tpu.memory_space<vmem>>, vector<64x16xf32>
    %c384 = arith.constant 384 : index
    %c0_7 = arith.constant 0 : index
    %6 = vector.load %arg1[%c384, %c0_7] : memref<424x128xf32, #tpu.memory_space<vmem>>, vector<1x16xf32>
    %c392 = arith.constant 392 : index
    %c0_8 = arith.constant 0 : index
    %7 = vector.load %arg1[%c392, %c0_8] : memref<424x128xf32, #tpu.memory_space<vmem>>, vector<32x1xf32>
    %cst = arith.constant dense<0.000000e+00> : vector<32x128xf32>
    %8 = tpu.matmul %0, %1, %cst {dimension_numbers = #tpu.dot_dimension_numbers<[1], [0], [0], [1], [0, 0, 1, 1], [], []>} : vector<32x16xf32>, vector<16x128xf32>, vector<32x128xf32> -> vector<32x128xf32>
    %cst_9 = arith.constant 0.000000e+00 : f32
    %9 = vector.broadcast %cst_9 : f32 to vector<32x128xf32>
    %10 = arith.maximumf %8, %9 : vector<32x128xf32>
    %cst_10 = arith.constant dense<0.000000e+00> : vector<32x1xf32>
    %11 = tpu.matmul %0, %2, %cst_10 {dimension_numbers = #tpu.dot_dimension_numbers<[1], [0], [0], [1], [0, 0, 1, 1], [], []>} : vector<32x16xf32>, vector<16x1xf32>, vector<32x1xf32> -> vector<32x1xf32>
    %cst_11 = arith.constant dense<0.000000e+00> : vector<32x128xf32>
    %12 = tpu.matmul %4, %10, %cst_11 {dimension_numbers = #tpu.dot_dimension_numbers<[1], [0], [0], [1], [0, 0, 1, 1], [], []>} : vector<32x32xf32>, vector<32x128xf32>, vector<32x128xf32> -> vector<32x128xf32>
    %13 = tpu.concatenate %12, %10 in 1 : vector<32x128xf32>, vector<32x128xf32> -> vector<32x256xf32>
    %cst_12 = arith.constant dense<0.000000e+00> : vector<32x32xf32>
    %14 = tpu.matmul %13, %3, %cst_12 {dimension_numbers = #tpu.dot_dimension_numbers<[1], [0], [0], [1], [0, 0, 1, 1], [], []>} : vector<32x256xf32>, vector<256x32xf32>, vector<32x32xf32> -> vector<32x32xf32>
    %cst_13 = arith.constant 0.000000e+00 : f32
    %15 = vector.broadcast %cst_13 : f32 to vector<32x32xf32>
    %16 = arith.maximumf %14, %15 : vector<32x32xf32>
    %cst_14 = arith.constant dense<0.000000e+00> : vector<32x32xf32>
    %17 = tpu.matmul %4, %16, %cst_14 {dimension_numbers = #tpu.dot_dimension_numbers<[1], [0], [0], [1], [0, 0, 1, 1], [], []>} : vector<32x32xf32>, vector<32x32xf32>, vector<32x32xf32> -> vector<32x32xf32>
    %18 = tpu.concatenate %17, %16 in 1 : vector<32x32xf32>, vector<32x32xf32> -> vector<32x64xf32>
    %cst_15 = arith.constant dense<0.000000e+00> : vector<32x16xf32>
    %19 = tpu.matmul %18, %5, %cst_15 {dimension_numbers = #tpu.dot_dimension_numbers<[1], [0], [0], [1], [0, 0, 1, 1], [], []>} : vector<32x64xf32>, vector<64x16xf32>, vector<32x16xf32> -> vector<32x16xf32>
    %20 = vector.broadcast %6 : vector<1x16xf32> to vector<32x16xf32>
    %21 = arith.addf %19, %20 : vector<32x16xf32>
    %cst_16 = arith.constant 0.000000e+00 : f32
    %22 = vector.broadcast %cst_16 : f32 to vector<32x16xf32>
    %23 = arith.maximumf %21, %22 : vector<32x16xf32>
    %cst_17 = arith.constant dense<0.000000e+00> : vector<32x16xf32>
    %24 = tpu.matmul %4, %23, %cst_17 {dimension_numbers = #tpu.dot_dimension_numbers<[1], [0], [0], [1], [0, 0, 1, 1], [], []>} : vector<32x32xf32>, vector<32x16xf32>, vector<32x16xf32> -> vector<32x16xf32>
    %25 = tpu.concatenate %24, %23 in 1 : vector<32x16xf32>, vector<32x16xf32> -> vector<32x32xf32>
    %cst_18 = arith.constant dense<0.000000e+00> : vector<32x1xf32>
    %26 = tpu.matmul %25, %7, %cst_18 {dimension_numbers = #tpu.dot_dimension_numbers<[1], [0], [0], [1], [0, 0, 1, 1], [], []>} : vector<32x32xf32>, vector<32x1xf32>, vector<32x1xf32> -> vector<32x1xf32>
    %27 = arith.addf %26, %11 : vector<32x1xf32>
    %c0_19 = arith.constant 0 : index
    %c0_20 = arith.constant 0 : index
    %28 = vector.load %arg2[%c0_19, %c0_20] : memref<32x1xf32, #tpu.memory_space<vmem>>, vector<32x1xf32>
    tpu.vector_store %arg2[%c0_19, %c0_20], %27 {strides = array<i32>} : memref<32x1xf32, #tpu.memory_space<vmem>>, vector<32x1xf32>,
    return
  }
}

</mosaic_0001>

<bundles_post_ra>
// kernel: rtegnn_forward.1
= control target key start
LH: loop header
LB: loop body
LE: loop exit
PB: predicated region body
PF: predicated region fallthrough
CT: control target
= control target key end

     0   :  { %7 = vsyncpa [#allocation3], 0  ;;  %s539_s12 = smov [#allocation2]   ;;  %s540_s14 = smov 128   ;;  %s650_s0 = inlined_call_operand.vmem [shape: f32[32,16], index: 0, kind: input, shape index: {}]   ;;  %s651_s1 = inlined_call_operand.hbm [shape: f32[424,128], index: 1, kind: input, shape index: {}]   ;;  %s652_s2 = inlined_call_operand.vmem [shape: f32[32,1], index: 2, kind: output, shape index: {}]  }
   0x1   :  { %s14_s11 = sshll.u32 %s651_s1, 4  ;;  %s16_s13 = sshll.u32 %s539_s12, 4  ;;  %s15_s11 = int_to_ptr.hbm [resolvable:$true] %s14_s11  ;;  %s17_s13 = int_to_ptr.vmem [resolvable:$true] %s16_s13 }
   0x2   :  { %s541_s15 = smov 8  }
   0x3   :  { %22 = dma.hbm_to_vmem [thread:$0]  %s15_s11, 6784, %s17_s13, [#allocation3], %s540_s14, %s540_s14, %s541_s15  }
   0x4   :  { %537 = dma.done.wait [#allocation3], 6784  }
   0x5   :  { %538 = vsyncadd [#allocation3], 4294960512  ;;  %v32_v0 = vld [vmem:[#allocation2 + $0x8] sm:$0xff]  ;;  %v31_v1 = vld [vmem:[#allocation2] sm:$0xff]  ;;  %vm84_vm0 = vcmask 130048   ;;  %vm159_vm1 = vcmask 261120  }
   0x6   :  { %111 = vmatpush.msra.mxu0 %v32_v0  ;;  %v27_v2 = vld [vmem:[%s650_s0] sm:$0xff]  ;;  %v66_v3 = vld [vmem:[#allocation2 + $0x118] sm:$0xff]  ;;  %v65_v4 = vld [vmem:[#allocation2 + $0x110] sm:$0xff]  ;;  %vm313_vm2 = vcmask 523264   ;;  %s543_s23 = smov 16   ;;  %vm449_vm3 = vcmask 7168  }
   0x7   :  { %v34_v5 = vld [vmem:[#allocation2 + $0x18] sm:$0xff]  ;;  %v33_v6 = vld [vmem:[#allocation2 + $0x10] sm:$0xff]  ;;  %v64_v7 = vld [vmem:[#allocation2 + $0x108] sm:$0xff] }
   0x8   :  { %112 = vmatpush.msra.mxu0 %v31_v1  ;;  %144 = vmatpush.msra.mxu1 %v34_v5  ;;  %v63_v8 = vld [vmem:[#allocation2 + $0x100] sm:$0xff]  ;;  %v28_v9 = vld [vmem:[%s650_s0 + $0x8] sm:$0xff]  ;;  %v62_v10 = vld [vmem:[#allocation2 + $0xf8] sm:$0xff] }
   0x9   :  { %459 = vmatmul.msk.f32.vlgmr.msra.gmra.mxu0 %vm84_vm0, %v27_v2  ;;  %v61_v11 = vld [vmem:[#allocation2 + $0xf0] sm:$0xff]  ;;  %v60_v12 = vld [vmem:[#allocation2 + $0xe8] sm:$0xff]  ;;  %v59_v13 = vld [vmem:[#allocation2 + $0xe0] sm:$0xff] }
   0xa   :  { %230 = vmatpush.msrb.mxu0 %v66_v3  ;;  %145 = vmatpush.msra.mxu1 %v33_v6  ;;  %v29_v14 = vld [vmem:[%s650_s0 + $0x10] sm:$0xff]  ;;  %v58_v15 = vld [vmem:[#allocation2 + $0xd8] sm:$0xff]  ;;  %v56_v17 = vld [vmem:[#allocation2 + $0xc8] sm:$0xff] }
   0xb   :  { %463 = vmatmul.msk.f32.vlgmr.msra.gmra.mxu1 %vm84_vm0, %v27_v2  ;;  %v57_v16 = vld [vmem:[#allocation2 + $0xd0] sm:$0xff]  ;;  %v55_v18 = vld [vmem:[#allocation2 + $0xc0] sm:$0xff]  ;;  %v30_v19 = vld [vmem:[%s650_s0 + $0x18] sm:$0xff]  ;;  %s542_s0 = smov 32  }
   0xc   :  { %231 = vmatpush.msrb.mxu0 %v65_v4  ;;  %487 = vmatpush.msrb.mxu1 %v66_v3  ;;  %v54_v20 = vld [vmem:[#allocation2 + $0xb8] sm:$0xff]  ;;  %v53_v21 = vld [vmem:[#allocation2 + $0xb0] sm:$0xff]  ;;  %v52_v22 = vld [vmem:[#allocation2 + $0xa8] sm:$0xff] }
   0xd   :  { %v51_v23 = vld [vmem:[#allocation2 + $0xa0] sm:$0xff]  ;;  %v586_v33 = vld [vmem:[#allocation2 + $0x128] sm:$0xff]  ;;  %v590_v34 = vld [vmem:[#allocation2 + $0x130] sm:$0xff] }
   0xe   :  { %232 = vmatpush.msrb.mxu0 %v64_v7  ;;  %488 = vmatpush.msrb.mxu1 %v65_v4  ;;  %v582_v32 = vld [vmem:[#allocation2 + $0x120] sm:$0xff]  ;;  %v594_v35 = vld [vmem:[#allocation2 + $0x138] sm:$0xff]  ;;  %v49_v37 = vld [vmem:[#allocation2 + $0x90] sm:$0xff] }
   0xf   :  { %v50_v36 = vld [vmem:[#allocation2 + $0x98] sm:$0xff]  ;;  %v48_v38 = vld [vmem:[#allocation2 + $0x88] sm:$0xff]  ;;  %v47_v39 = vld [vmem:[#allocation2 + $0x80] sm:$0xff] }
  0x10   :  { %233 = vmatpush.msrb.mxu0 %v63_v8  ;;  %489 = vmatpush.msrb.mxu1 %v64_v7  ;;  %v46_v40 = vld [vmem:[#allocation2 + $0x78] sm:$0xff]  ;;  %v45_v41 = vld [vmem:[#allocation2 + $0x70] sm:$0xff]  ;;  %v44_v42 = vld [vmem:[#allocation2 + $0x68] sm:$0xff] }
  0x11   :  { %460 = vmatmul.msk.f32.gmra.mxu0 %vm84_vm0, %v28_v9  ;;  %201 = vmatpush.msra.mxu3 %v50_v36  ;;  %v43_v43 = vld [vmem:[#allocation2 + $0x60] sm:$0xff]  ;;  %v42_v44 = vld [vmem:[#allocation2 + $0x58] sm:$0xff]  ;;  %v41_v45 = vld [vmem:[#allocation2 + $0x50] sm:$0xff] }
  0x12   :  { %234 = vmatpush.msrb.mxu0 %v62_v10  ;;  %490 = vmatpush.msrb.mxu1 %v63_v8  ;;  %v40_v46 = vld [vmem:[#allocation2 + $0x48] sm:$0xff]  ;;  %v39_v47 = vld [vmem:[#allocation2 + $0x40] sm:$0xff]  ;;  %v38_v48 = vld [vmem:[#allocation2 + $0x38] sm:$0xff] }
  0x13   :  { %464 = vmatmul.msk.f32.gmra.mxu1 %vm84_vm0, %v28_v9  ;;  %202 = vmatpush.msra.mxu3 %v49_v37  ;;  %v37_v49 = vld [vmem:[#allocation2 + $0x30] sm:$0xff]  ;;  %v36_v50 = vld [vmem:[#allocation2 + $0x28] sm:$0xff]  ;;  %v35_v51 = vld [vmem:[#allocation2 + $0x20] sm:$0xff] }
  0x14   :  { %235 = vmatpush.msrb.mxu0 %v61_v11  ;;  %491 = vmatpush.msrb.mxu1 %v62_v10  ;;  %v512_v36 = vld [vmem:[#allocation2 + $0x180] ss:$0 sm:$0xff] }
  0x15   :  { %203 = vmatpush.msra.mxu3 %v48_v38 }
  0x16   :  { %236 = vmatpush.msrb.mxu0 %v60_v12  ;;  %492 = vmatpush.msrb.mxu1 %v61_v11 }
  0x17   :  { %204 = vmatpush.msra.mxu3 %v47_v39 }
  0x18   :  { %237 = vmatpush.msrb.mxu0 %v59_v13  ;;  %493 = vmatpush.msrb.mxu1 %v60_v12  ;;  %v78_v12 = vld [vmem:[#allocation2 + $0x178] sm:$0xff] }
  0x19   :  { %461 = vmatmul.msk.f32.gmra.mxu0 %vm84_vm0, %v29_v14  ;;  %205 = vmatpush.msra.mxu3 %v46_v40 }
  0x1a   :  { %238 = vmatpush.msrb.mxu0 %v58_v15  ;;  %494 = vmatpush.msrb.mxu1 %v59_v13  ;;  %v77_v13 = vld [vmem:[#allocation2 + $0x170] sm:$0xff] }
  0x1b   :  { %465 = vmatmul.msk.f32.gmra.mxu1 %vm84_vm0, %v29_v14  ;;  %206 = vmatpush.msra.mxu3 %v45_v41  ;;  %v76_v14 = vld [vmem:[#allocation2 + $0x168] sm:$0xff] }
  0x1c   :  { %239 = vmatpush.msrb.mxu0 %v57_v16  ;;  %495 = vmatpush.msrb.mxu1 %v58_v15  ;;  %v75_v15 = vld [vmem:[#allocation2 + $0x160] sm:$0xff] }
  0x1d   :  { %207 = vmatpush.msra.mxu3 %v44_v42 }
  0x1e   :  { %240 = vmatpush.msrb.mxu0 %v56_v17  ;;  %496 = vmatpush.msrb.mxu1 %v57_v16  ;;  %v74_v16 = vld [vmem:[#allocation2 + $0x158] sm:$0xff] }
  0x1f   :  { %208 = vmatpush.msra.mxu3 %v43_v43 }
  0x20   :  { %241 = vmatpush.msrb.mxu0 %v55_v18  ;;  %497 = vmatpush.msrb.mxu1 %v56_v17  ;;  %v73_v17 = vld [vmem:[#allocation2 + $0x150] sm:$0xff] }
  0x21   :  { %462 = vmatmul.msk.f32.gmra.mxu0 %vm84_vm0, %v30_v19  ;;  %209 = vmatpush.msra.mxu3 %v42_v44 }
  0x22   :  { %242 = vmatpush.msrb.mxu0 %v54_v20  ;;  %498 = vmatpush.msrb.mxu1 %v55_v18  ;;  %v72_v18 = vld [vmem:[#allocation2 + $0x148] sm:$0xff] }
  0x23   :  { %466 = vmatmul.msk.f32.gmra.mxu1 %vm84_vm0, %v30_v19  ;;  %210 = vmatpush.msra.mxu3 %v41_v45  ;;  %v71_v19 = vld [vmem:[#allocation2 + $0x140] sm:$0xff] }
  0x24   :  { %243 = vmatpush.msrb.mxu0 %v53_v21  ;;  %499 = vmatpush.msrb.mxu1 %v54_v20 }
  0x25   :  { %211 = vmatpush.msra.mxu3 %v40_v46 }
  0x26   :  { %500 = vmatpush.msrb.mxu1 %v53_v21  ;;  %244 = vmatpush.msrb.mxu0 %v52_v22 }
  0x27   :  { %212 = vmatpush.msra.mxu3 %v39_v47 }
  0x28   :  { %501 = vmatpush.msrb.mxu1 %v52_v22  ;;  %245 = vmatpush.msrb.mxu0 %v51_v23 }
  0x29   :  { %213 = vmatpush.msra.mxu3 %v38_v48 }
  0x2a   :  { %502 = vmatpush.msrb.mxu1 %v51_v23 }
  0x2b   :  { %214 = vmatpush.msra.mxu3 %v37_v49  ;;  %v83_v49 = vld [vmem:[#allocation2 + $0x1a0] sm:$0xff] }
  0x2c   :  { %432 = vmatpush.msra.mxu0 %v83_v49 }
  0x2d   :  { %215 = vmatpush.msra.mxu3 %v36_v50  ;;  %v82_v50 = vld [vmem:[#allocation2 + $0x198] sm:$0xff] }
  0x2e   :  { %433 = vmatpush.msra.mxu0 %v82_v50 }
  0x2f   :  { %216 = vmatpush.msra.mxu3 %v35_v51  ;;  %v81_v51 = vld [vmem:[#allocation2 + $0x190] sm:$0xff] }
  0x30   :  { %434 = vmatpush.msra.mxu0 %v81_v51 }
  0x86   :  { %v114_v24 = vpop.f32.mrf.mxu0 }
  0x87   :  { %v126_v25 = vmax.f32 %v114_v24, 0.0 }
  0x88   :  { %v598_v56 = vpop.f32.mrf.mxu1 }
  0x89   :  { %246 = vmatmul.f32.vlgmr.msrb.gmra.mxu0 %v126_v25 }
  0x8e   :  { %v117_v26 = vpop.f32.mrf.mxu0 }
  0x8f   :  { %v127_v27 = vmax.f32 %v117_v26, 0.0 }
  0x90   :  { %v600_v57 = vpop.f32.mrf.mxu1 }
  0x91   :  { %249 = vmatmul.f32.gmra.mxu0 %v127_v27 }
  0x96   :  { %v120_v28 = vpop.f32.mrf.mxu0 }
  0x97   :  { %v128_v29 = vmax.f32 %v120_v28, 0.0 }
  0x98   :  { %v602_v58 = vpop.f32.mrf.mxu1 }
  0x99   :  { %252 = vmatmul.f32.vlgmr.msrb.gmra.mxu1 %v128_v29 }
  0x9e   :  { %v123_v30 = vpop.f32.mrf.mxu0 }
  0x9f   :  { %v129_v31 = vmax.f32 %v123_v30, 0.0 }
  0xa0   :  { %v604_v63 = vpop.f32.mrf.mxu1 }
  0xa1   :  { %184 = vmatpush.msra.mxu2 %v129_v31  ;;  %255 = vmatmul.f32.gmra.mxu1 %v129_v31 }
  0xa3   :  { %185 = vmatpush.msra.mxu2 %v128_v29 }
  0xa5   :  { %186 = vmatpush.msra.mxu2 %v127_v27 }
  0xa7   :  { %187 = vmatpush.msra.mxu2 %v126_v25 }
  0xa8   :  { %467 = vmatmul.msk.f32.vlgmr.msra.gmra.mxu2 %vm159_vm1, %v582_v32 }
  0xa9   :  { %334 = vmatpush.msrb.mxu2 %v78_v12 }
  0xab   :  { %335 = vmatpush.msrb.mxu2 %v77_v13 }
  0xad   :  { %336 = vmatpush.msrb.mxu2 %v76_v14 }
  0xaf   :  { %337 = vmatpush.msrb.mxu2 %v75_v15 }
  0xb0   :  { %468 = vmatmul.msk.f32.gmra.mxu2 %vm159_vm1, %v586_v33 }
  0xb1   :  { %338 = vmatpush.msrb.mxu2 %v74_v16 }
  0xb3   :  { %339 = vmatpush.msrb.mxu2 %v73_v17 }
  0xb5   :  { %340 = vmatpush.msrb.mxu2 %v72_v18 }
  0xb7   :  { %341 = vmatpush.msrb.mxu2 %v71_v19 }
  0xb8   :  { %469 = vmatmul.msk.f32.gmra.mxu2 %vm159_vm1, %v590_v34 }
  0xc0   :  { %470 = vmatmul.msk.f32.gmra.mxu2 %vm159_vm1, %v594_v35 }
 0x106   :  { %v247_v59 = vpop.f32.mrf.mxu0 }
 0x10e   :  { %v250_v0 = vpop.f32.mrf.mxu0 }
 0x116   :  { %v253_v4 = vpop.f32.mrf.mxu1 }
 0x11e   :  { %v256_v8 = vpop.f32.mrf.mxu1 }
 0x12b   :  { %v189_v52 = vpop.f32.mrf.mxu2 }
 0x12c   :  { %217 = vmatmul.f32.vlgmr.msra.gmra.mxu3 %v189_v52  ;;  %v80_v52 = vld [vmem:[#allocation2 + $0x188] sm:$0xff] }
 0x12d   :  { %435 = vmatpush.msra.mxu0 %v80_v52 }
 0x133   :  { %v192_v53 = vpop.f32.mrf.mxu2 }
 0x134   :  { %220 = vmatmul.f32.gmra.mxu3 %v192_v53 }
 0x13b   :  { %v195_v54 = vpop.f32.mrf.mxu2 }
 0x13c   :  { %223 = vmatmul.f32.gmra.mxu3 %v195_v54 }
 0x143   :  { %v198_v55 = vpop.f32.mrf.mxu2 }
 0x144   :  { %226 = vmatmul.f32.gmra.mxu3 %v198_v55 }
 0x1af   :  { %v218_v60 = vpop.f32.mrf.mxu3 }
 0x1b0   :  { %v248_v61 = vadd.f32 %v247_v59, %v218_v60 }
 0x1b2   :  { %v259_v62 = vmax.f32 %v248_v61, 0.0 }
 0x1b4   :  { %296 = vrot.lane.b32.xlu0 %v259_v62, %s542_s0 }
 0x1b7   :  { %v221_v1 = vpop.f32.mrf.mxu3 }
 0x1b8   :  { %v251_v2 = vadd.f32 %v250_v0, %v221_v1 }
 0x1ba   :  { %v260_v3 = vmax.f32 %v251_v2, 0.0 }
 0x1bc   :  { %298 = vrot.lane.b32.xlu0 %v260_v3, %s542_s0 }
 0x1bf   :  { %v224_v5 = vpop.f32.mrf.mxu3 }
 0x1c0   :  { %v254_v6 = vadd.f32 %v253_v4, %v224_v5 }
 0x1c2   :  { %v261_v7 = vmax.f32 %v254_v6, 0.0 }
 0x1c4   :  { %300 = vrot.lane.b32.xlu1 %v261_v7, %s542_s0 }
 0x1c7   :  { %v227_v9 = vpop.f32.mrf.mxu3 }
 0x1c8   :  { %v257_v10 = vadd.f32 %v256_v8, %v227_v9 }
 0x1ca   :  { %v262_v11 = vmax.f32 %v257_v10, 0.0 }
 0x1cc   :  { %302 = vrot.lane.b32.xlu1 %v262_v11, %s542_s0  ;;  %275 = vmatpush.msra.mxu1 %v262_v11 }
 0x1ce   :  { %276 = vmatpush.msra.mxu1 %v261_v7 }
 0x1d0   :  { %277 = vmatpush.msra.mxu1 %v260_v3 }
 0x1d2   :  { %278 = vmatpush.msra.mxu1 %v259_v62 }
 0x1d3   :  { %471 = vmatmul.msk.f32.vlgmr.msra.gmra.mxu1 %vm159_vm1, %v582_v32 }
 0x1db   :  { %472 = vmatmul.msk.f32.gmra.mxu1 %vm159_vm1, %v586_v33 }
 0x1e3   :  { %473 = vmatmul.msk.f32.gmra.mxu1 %vm159_vm1, %v590_v34 }
 0x1eb   :  { %474 = vmatmul.msk.f32.gmra.mxu1 %vm159_vm1, %v594_v35 }
 0x226   :  { %v297_v20 = vpop.permute.xlu0 %296 }
 0x22e   :  { %v299_v23 = vpop.permute.xlu0 %298 }
 0x236   :  { %v301_v26 = vpop.permute.xlu1 %300 }
 0x23e   :  { %v303_v29 = vpop.permute.xlu1 %302 }
 0x250   :  { %v280_v21 = vpop.f32.mrf.mxu1 }
 0x251   :  { %v308_v22 = vsel %vm159_vm1, %v280_v21, %v297_v20 }
 0x252   :  { %475 = vmatmul.msk.f32.vlgmr.msrb.gmra.mxu2 %vm313_vm2, %v308_v22 }
 0x258   :  { %v283_v24 = vpop.f32.mrf.mxu1 }
 0x259   :  { %v309_v25 = vsel %vm159_vm1, %v283_v24, %v299_v23 }
 0x25a   :  { %476 = vmatmul.msk.f32.gmra.mxu2 %vm313_vm2, %v309_v25 }
 0x260   :  { %v286_v27 = vpop.f32.mrf.mxu1 }
 0x261   :  { %v310_v28 = vsel %vm159_vm1, %v286_v27, %v301_v26 }
 0x262   :  { %477 = vmatmul.msk.f32.gmra.mxu2 %vm313_vm2, %v310_v28 }
 0x268   :  { %v289_v30 = vpop.f32.mrf.mxu1 }
 0x269   :  { %v311_v31 = vsel %vm159_vm1, %v289_v30, %v303_v29 }
 0x26a   :  { %478 = vmatmul.msk.f32.gmra.mxu2 %vm313_vm2, %v311_v31 }
 0x2d5   :  { %v343_v37 = vpop.f32.mrf.mxu2 }
 0x2d6   :  { %v344_v38 = vadd.f32 %v512_v36, %v343_v37 }
 0x2d8   :  { %v355_v39 = vmax.f32 %v344_v38, 0.0 }
 0x2da   :  { %392 = vrot.lane.b32.xlu2 %v355_v39, %s543_s23 }
 0x2dd   :  { %v346_v40 = vpop.f32.mrf.mxu2 }
 0x2de   :  { %v347_v41 = vadd.f32 %v512_v36, %v346_v40 }
 0x2e0   :  { %v356_v42 = vmax.f32 %v347_v41, 0.0 }
 0x2e2   :  { %394 = vrot.lane.b32.xlu2 %v356_v42, %s543_s23 }
 0x2e5   :  { %v349_v43 = vpop.f32.mrf.mxu2 }
 0x2e6   :  { %v350_v44 = vadd.f32 %v512_v36, %v349_v43 }
 0x2e8   :  { %v357_v45 = vmax.f32 %v350_v44, 0.0 }
 0x2ea   :  { %396 = vrot.lane.b32.xlu0 %v357_v45, %s543_s23 }
 0x2ed   :  { %v352_v46 = vpop.f32.mrf.mxu2 }
 0x2ee   :  { %v353_v47 = vadd.f32 %v512_v36, %v352_v46 }
 0x2f0   :  { %v358_v48 = vmax.f32 %v353_v47, 0.0 }
 0x2f2   :  { %398 = vrot.lane.b32.xlu1 %v358_v48, %s543_s23  ;;  %371 = vmatpush.msra.mxu2 %v358_v48 }
 0x2f3   :  { %503 = vmatpush.msrb.mxu3 %v358_v48 }
 0x2f4   :  { %372 = vmatpush.msra.mxu2 %v357_v45 }
 0x2f5   :  { %504 = vmatpush.msrb.mxu3 %v357_v45 }
 0x2f6   :  { %373 = vmatpush.msra.mxu2 %v356_v42 }
 0x2f7   :  { %505 = vmatpush.msrb.mxu3 %v356_v42 }
 0x2f8   :  { %374 = vmatpush.msra.mxu2 %v355_v39 }
 0x2f9   :  { %506 = vmatpush.msrb.mxu3 %v355_v39  ;;  %479 = vmatmul.msk.f32.vlgmr.msra.gmra.mxu2 %vm159_vm1, %v582_v32 }
 0x2fa   :  { %480 = vmatmul.msk.f32.vlgmr.msrb.gmra.mxu3 %vm159_vm1, %v586_v33 }
 0x302   :  { %481 = vmatmul.msk.f32.gmra.mxu3 %vm159_vm1, %v590_v34 }
 0x30a   :  { %482 = vmatmul.msk.f32.gmra.mxu3 %vm159_vm1, %v594_v35 }
 0x334   :  { %v393_v53 = vpop.permute.xlu2 %392 }
 0x33c   :  { %v395_v33 = vpop.permute.xlu2 %394 }
 0x35c   :  { %v397_v59 = vpop.permute.xlu0 %396 }
 0x364   :  { %v399_v62 = vpop.permute.xlu1 %398 }
 0x37c   :  { %v376_v54 = vpop.f32.mrf.mxu2 }
 0x37d   :  { %v404_v32 = vsel %vm84_vm0, %v376_v54, %v393_v53  ;;  %v379_v55 = vpop.f32.mrf.mxu3 }
 0x37e   :  { %483 = vmatmul.msk.f32.vlgmr.msra.gmra.mxu0 %vm159_vm1, %v404_v32  ;;  %v405_v34 = vsel %vm84_vm0, %v379_v55, %v395_v33 }
 0x385   :  { %v382_v35 = vpop.f32.mrf.mxu3 }
 0x386   :  { %484 = vmatmul.msk.f32.gmra.mxu0 %vm159_vm1, %v405_v34  ;;  %v406_v60 = vsel %vm84_vm0, %v382_v35, %v397_v59 }
 0x38d   :  { %v385_v61 = vpop.f32.mrf.mxu3 }
 0x38e   :  { %485 = vmatmul.msk.f32.gmra.mxu0 %vm159_vm1, %v406_v60  ;;  %v407_v0 = vsel %vm84_vm0, %v385_v61, %v399_v62 }
 0x396   :  { %486 = vmatmul.msk.f32.gmra.mxu0 %vm159_vm1, %v407_v0 }
 0x3fb   :  { %v437_v1 = vpop.f32.mrf.mxu0 }
 0x3fc   :  { %v438_v2 = vadd.f32 %v437_v1, %v598_v56 }
 0x3fe   :  { %450 = vst.msk [vmem:[%s652_s2] sm:$0xff] %vm449_vm3, %v438_v2 }
 0x403   :  { %v440_v3 = vpop.f32.mrf.mxu0 }
 0x404   :  { %v441_v4 = vadd.f32 %v440_v3, %v600_v57 }
 0x406   :  { %451 = vst.msk [vmem:[%s652_s2 + $0x8] sm:$0xff] %vm449_vm3, %v441_v4 }
 0x40b   :  { %v443_v5 = vpop.f32.mrf.mxu0 }
 0x40c   :  { %v444_v6 = vadd.f32 %v443_v5, %v602_v58 }
 0x40e   :  { %452 = vst.msk [vmem:[%s652_s2 + $0x10] sm:$0xff] %vm449_vm3, %v444_v6 }
 0x413   :  { %v446_v7 = vpop.f32.mrf.mxu0 }
 0x414   :  { %v447_v56 = vadd.f32 %v446_v7, %v604_v63 }
 0x416   :  { %453 = vst.msk [vmem:[%s652_s2 + $0x18] sm:$0xff] %vm449_vm3, %v447_v56 }
 0x417   :  { %458 = vsyncpa [#allocation3], 1 }

</bundles_post_ra>
